<compile_context>
chip_gen: v5e
topology: v5e:2x2
jax: 0.10.0
libtpu: 0.0.40
codegen_flags: <defaults>
</compile_context>

<pallas_src>
import math
import jax
import jax.numpy as jnp
from jax import lax
from jax.experimental import pallas as pl
from jax.experimental.pallas import tpu as pltpu

N_EMBD = 128
HIDDEN = 4 * N_EMBD
_CHUNK = 256            # hidden-dim chunk (multiple of 128 lanes)
_INV_SQRT2 = 1.0 / math.sqrt(2.0)


def _ff_kernel(x_ref, w1_ref, b1_ref, w2_ref, b2_ref, o_ref):
    # x_ref : (tm, C)  f32   (cast to bf16 in-kernel, on the VPU)
    # w1_ref: (C, 4C)  bf16  | b1_ref: (1, 4C) f32
    # w2_ref: (4C, C)  bf16  | b2_ref: (1, C)  f32
    # o_ref : (tm, C)  f32
    x = x_ref[...].astype(jnp.bfloat16)
    H = w1_ref.shape[1]
    chunk = min(_CHUNK, H)
    n_chunks = H // chunk

    acc = None
    # Unrolled chunk loop over the hidden dim: overlap MXU (mm1/mm2) with the
    # VALU-heavy exact GELU and keep the live f32 intermediate small.
    for k in range(n_chunks):
        lo, hi = k * chunk, (k + 1) * chunk
        h = jnp.dot(x, w1_ref[:, lo:hi], preferred_element_type=jnp.float32)
        h = h + b1_ref[:, lo:hi]
        # exact (erf-based) GELU in f32 -> matches torch.nn.GELU() default
        h = 0.5 * h * (1.0 + lax.erf(h * _INV_SQRT2))
        part = jnp.dot(h.astype(jnp.bfloat16), w2_ref[lo:hi, :],
                       preferred_element_type=jnp.float32)
        acc = part if acc is None else acc + part

    o_ref[...] = (acc + b2_ref[...]).astype(o_ref.dtype)


def prepare_params(w1, b1, w2, b2):
    """One-time transpose + bf16 cast (hoisted out of the forward path).

    PyTorch nn.Linear convention: weight is (out_features, in_features).
    """
    w1t = jnp.asarray(w1, jnp.float32).T.astype(jnp.bfloat16)   # (C, 4C)
    w2t = jnp.asarray(w2, jnp.float32).T.astype(jnp.bfloat16)   # (4C, C)
    b1r = jnp.asarray(b1, jnp.float32).reshape(1, -1)           # (1, 4C)
    b2r = jnp.asarray(b2, jnp.float32).reshape(1, -1)           # (1, C)
    return w1t, b1r, w2t, b2r


def _round_up(n, m):
    return ((n + m - 1) // m) * m


def _choose_tm(M, tm_max):
    # Aim for >= ~4 grid steps (shards the "parallel" axis across both v7x
    # TensorCores and hides per-step overhead), clamp to tm_max for VMEM, and
    # never exceed the 8-aligned problem size for tiny inputs.
    target = _round_up(-(-M // 4), 8)               # cdiv(M, 4), 8-aligned
    return max(8, min(tm_max, target, _round_up(M, 8)))


def feed_forward(x, w1t, b1r, w2t, b2r, *, tm_max=1024):
    """x: (B, T, C) f32.  Params from prepare_params()."""
    B, T, C = x.shape
    H = w1t.shape[1]
    M = B * T

    tm = _choose_tm(M, tm_max)
    grid_m = pl.cdiv(M, tm)          # partial last block handled by Pallas

    x2 = x.reshape(M, C)             # view; no pad, no dtype cast in HBM

    out = pl.pallas_call(
        _ff_kernel,
        out_shape=jax.ShapeDtypeStruct((M, C), jnp.float32),
        grid_spec=pltpu.PrefetchScalarGridSpec(
            num_scalar_prefetch=0,
            grid=(grid_m,),
            in_specs=[
                pl.BlockSpec((tm, C), lambda i: (i, 0)),
                # Constant-index blocks: weights/biases stay resident in VMEM
                # (Pallas skips the re-copy when the block index is unchanged).
                pl.BlockSpec((C, H), lambda i: (0, 0)),
                pl.BlockSpec((1, H), lambda i: (0, 0)),
                pl.BlockSpec((H, C), lambda i: (0, 0)),
                pl.BlockSpec((1, C), lambda i: (0, 0)),
            ],
            out_specs=pl.BlockSpec((tm, C), lambda i: (i, 0)),
        ),
        compiler_params=pltpu.CompilerParams(
            dimension_semantics=("parallel",)),
    )(x2, w1t, b1r, w2t, b2r)

    return out.reshape(B, T, C)


def _init_params(key, n_embd):
    # Deterministic init mimicking nn.Linear's uniform(-1/sqrt(fan_in), ...).
    k1, k2, k3, k4 = jax.random.split(key, 4)
    h = 4 * n_embd
    bound1 = 1.0 / math.sqrt(n_embd)
    bound2 = 1.0 / math.sqrt(h)
    w1 = jax.random.uniform(k1, (h, n_embd), jnp.float32, -bound1, bound1)
    b1 = jax.random.uniform(k2, (h,), jnp.float32, -bound1, bound1)
    w2 = jax.random.uniform(k3, (n_embd, h), jnp.float32, -bound2, bound2)
    b2 = jax.random.uniform(k4, (n_embd,), jnp.float32, -bound2, bound2)
    return w1, b1, w2, b2


def _reference(x, w1, b1, w2, b2):
    # Plain-JAX f32 reference with exact GELU (torch.nn.GELU() semantics).
    h = x @ w1.T + b1
    h = 0.5 * h * (1.0 + lax.erf(h / math.sqrt(2.0)))
    return h @ w2.T + b2


if __name__ == "__main__":
    key = jax.random.PRNGKey(0)
    kx, kx2, kp = jax.random.split(key, 3)

    C = N_EMBD
    w1, b1, w2, b2 = _init_params(kp, C)
    params = prepare_params(w1, b1, w2, b2)   # one-time transpose + bf16 cast

    # Case 1: small aligned shape (M = 16).
    B, T = 2, 8
    x = jax.random.normal(kx, (B, T, C), jnp.float32)
    out = jax.block_until_ready(feed_forward(x, *params))
    ref = _reference(x, w1, b1, w2, b2)
    assert out.shape == (B, T, C)
    assert jnp.allclose(out, ref, atol=2e-2, rtol=2e-2), (
        float(jnp.max(jnp.abs(out - ref))))

    # Case 2: ragged M (exercises the masked partial-last-block path).
    B2, T2 = 3, 37                     # M = 111, not a multiple of 8
    x2 = jax.random.normal(kx2, (B2, T2, C), jnp.float32)
    out2 = jax.block_until_ready(feed_forward(x2, *params))
    ref2 = _reference(x2, w1, b1, w2, b2)
    assert out2.shape == (B2, T2, C)
    assert jnp.allclose(out2, ref2, atol=2e-2, rtol=2e-2), (
        float(jnp.max(jnp.abs(out2 - ref2))))

    print("KERNEL_OK")
</pallas_src>

<mosaic_0001>
module attributes {stable_mosaic.version = 11 : i64} {
  func.func @_ff_kernel(%arg0: i32, %arg1: memref<8x128xf32, #tpu.memory_space<vmem>>, %arg2: memref<128x512xbf16, #tpu.memory_space<vmem>>, %arg3: memref<1x512xf32, #tpu.memory_space<vmem>>, %arg4: memref<512x128xbf16, #tpu.memory_space<vmem>>, %arg5: memref<1x128xf32, #tpu.memory_space<vmem>>, %arg6: memref<8x128xf32, #tpu.memory_space<vmem>>) attributes {dimension_semantics = [#tpu.dimension_semantics<parallel>], iteration_bounds = array<i64: 2>, scalar_prefetch = 0 : i64, scratch_operands = 0 : i64, tpu.core_type = #tpu.core_type<tc>, window_params = [{transform_indices = @transform_0, window_bounds = array<i64: 8, 128>}, {pipeline_mode = #tpu.pipeline_mode<synchronous>, transform_indices = @transform_1, window_bounds = array<i64: 128, 512>}, {pipeline_mode = #tpu.pipeline_mode<synchronous>, transform_indices = @transform_2, window_bounds = array<i64: 1, 512>}, {pipeline_mode = #tpu.pipeline_mode<synchronous>, transform_indices = @transform_3, window_bounds = array<i64: 512, 128>}, {pipeline_mode = #tpu.pipeline_mode<synchronous>, transform_indices = @transform_4, window_bounds = array<i64: 1, 128>}, {transform_indices = @transform_5, window_bounds = array<i64: 8, 128>}]} {
    %c0 = arith.constant 0 : index
    %c0_0 = arith.constant 0 : index
    %0 = vector.load %arg1[%c0, %c0_0] : memref<8x128xf32, #tpu.memory_space<vmem>>, vector<8x128xf32>
    %1 = arith.truncf %0 : vector<8x128xf32> to vector<8x128xbf16>
    %c0_1 = arith.constant 0 : index
    %c0_2 = arith.constant 0 : index
    %2 = vector.load %arg2[%c0_1, %c0_2] : memref<128x512xbf16, #tpu.memory_space<vmem>>, vector<128x256xbf16>
    %cst = arith.constant dense<0.000000e+00> : vector<8x256xf32>
    %3 = tpu.matmul %1, %2, %cst {dimension_numbers = #tpu.dot_dimension_numbers<[1], [0], [0], [1], [0, 0, 1, 1], [], []>} : vector<8x128xbf16>, vector<128x256xbf16>, vector<8x256xf32> -> vector<8x256xf32>
    %c0_3 = arith.constant 0 : index
    %c0_4 = arith.constant 0 : index
    %4 = vector.load %arg3[%c0_3, %c0_4] : memref<1x512xf32, #tpu.memory_space<vmem>>, vector<1x256xf32>
    %5 = vector.broadcast %4 : vector<1x256xf32> to vector<8x256xf32>
    %6 = arith.addf %3, %5 : vector<8x256xf32>
    %cst_5 = arith.constant 5.000000e-01 : f32
    %7 = vector.broadcast %cst_5 : f32 to vector<8x256xf32>
    %8 = arith.mulf %7, %6 : vector<8x256xf32>
    %cst_6 = arith.constant 0.707106769 : f32
    %9 = vector.broadcast %cst_6 : f32 to vector<8x256xf32>
    %10 = arith.mulf %6, %9 : vector<8x256xf32>
    %11 = math.erf %10 : vector<8x256xf32>
    %cst_7 = arith.constant 1.000000e+00 : f32
    %12 = vector.broadcast %cst_7 : f32 to vector<8x256xf32>
    %13 = arith.addf %12, %11 : vector<8x256xf32>
    %14 = arith.mulf %8, %13 : vector<8x256xf32>
    %15 = arith.truncf %14 : vector<8x256xf32> to vector<8x256xbf16>
    %c0_8 = arith.constant 0 : index
    %c0_9 = arith.constant 0 : index
    %16 = vector.load %arg4[%c0_8, %c0_9] : memref<512x128xbf16, #tpu.memory_space<vmem>>, vector<256x128xbf16>
    %cst_10 = arith.constant dense<0.000000e+00> : vector<8x128xf32>
    %17 = tpu.matmul %15, %16, %cst_10 {dimension_numbers = #tpu.dot_dimension_numbers<[1], [0], [0], [1], [0, 0, 1, 1], [], []>} : vector<8x256xbf16>, vector<256x128xbf16>, vector<8x128xf32> -> vector<8x128xf32>
    %c0_11 = arith.constant 0 : index
    %c256 = arith.constant 256 : index
    %18 = vector.load %arg2[%c0_11, %c256] : memref<128x512xbf16, #tpu.memory_space<vmem>>, vector<128x256xbf16>
    %cst_12 = arith.constant dense<0.000000e+00> : vector<8x256xf32>
    %19 = tpu.matmul %1, %18, %cst_12 {dimension_numbers = #tpu.dot_dimension_numbers<[1], [0], [0], [1], [0, 0, 1, 1], [], []>} : vector<8x128xbf16>, vector<128x256xbf16>, vector<8x256xf32> -> vector<8x256xf32>
    %c0_13 = arith.constant 0 : index
    %c256_14 = arith.constant 256 : index
    %20 = vector.load %arg3[%c0_13, %c256_14] : memref<1x512xf32, #tpu.memory_space<vmem>>, vector<1x256xf32>
    %21 = vector.broadcast %20 : vector<1x256xf32> to vector<8x256xf32>
    %22 = arith.addf %19, %21 : vector<8x256xf32>
    %cst_15 = arith.constant 5.000000e-01 : f32
    %23 = vector.broadcast %cst_15 : f32 to vector<8x256xf32>
    %24 = arith.mulf %23, %22 : vector<8x256xf32>
    %cst_16 = arith.constant 0.707106769 : f32
    %25 = vector.broadcast %cst_16 : f32 to vector<8x256xf32>
    %26 = arith.mulf %22, %25 : vector<8x256xf32>
    %27 = math.erf %26 : vector<8x256xf32>
    %cst_17 = arith.constant 1.000000e+00 : f32
    %28 = vector.broadcast %cst_17 : f32 to vector<8x256xf32>
    %29 = arith.addf %28, %27 : vector<8x256xf32>
    %30 = arith.mulf %24, %29 : vector<8x256xf32>
    %31 = arith.truncf %30 : vector<8x256xf32> to vector<8x256xbf16>
    %c256_18 = arith.constant 256 : index
    %c0_19 = arith.constant 0 : index
    %32 = vector.load %arg4[%c256_18, %c0_19] : memref<512x128xbf16, #tpu.memory_space<vmem>>, vector<256x128xbf16>
    %cst_20 = arith.constant dense<0.000000e+00> : vector<8x128xf32>
    %33 = tpu.matmul %31, %32, %cst_20 {dimension_numbers = #tpu.dot_dimension_numbers<[1], [0], [0], [1], [0, 0, 1, 1], [], []>} : vector<8x256xbf16>, vector<256x128xbf16>, vector<8x128xf32> -> vector<8x128xf32>
    %34 = arith.addf %17, %33 : vector<8x128xf32>
    %c0_21 = arith.constant 0 : index
    %c0_22 = arith.constant 0 : index
    %35 = vector.load %arg5[%c0_21, %c0_22] : memref<1x128xf32, #tpu.memory_space<vmem>>, vector<1x128xf32>
    %36 = vector.broadcast %35 : vector<1x128xf32> to vector<8x128xf32>
    %37 = arith.addf %34, %36 : vector<8x128xf32>
    %c0_23 = arith.constant 0 : index
    %c0_24 = arith.constant 0 : index
    %38 = vector.load %arg6[%c0_23, %c0_24] : memref<8x128xf32, #tpu.memory_space<vmem>>, vector<8x128xf32>
    tpu.vector_store %arg6[%c0_23, %c0_24], %37 {strides = array<i32>} : memref<8x128xf32, #tpu.memory_space<vmem>>, vector<8x128xf32>,
    return
  }
  func.func @transform_0(%arg0: i32) -> (i32, i32) {
    %c0_i32 = arith.constant 0 : i32
    %c0_i32_0 = arith.constant 0 : i32
    return %arg0, %c0_i32 : i32, i32
  }
  func.func @transform_1(%arg0: i32) -> (i32, i32) {
    %c0_i32 = arith.constant 0 : i32
    %c0_i32_0 = arith.constant 0 : i32
    %c0_i32_1 = arith.constant 0 : i32
    return %c0_i32, %c0_i32_0 : i32, i32
  }
  func.func @transform_2(%arg0: i32) -> (i32, i32) {
    %c0_i32 = arith.constant 0 : i32
    %c0_i32_0 = arith.constant 0 : i32
    %c0_i32_1 = arith.constant 0 : i32
    return %c0_i32, %c0_i32_0 : i32, i32
  }
  func.func @transform_3(%arg0: i32) -> (i32, i32) {
    %c0_i32 = arith.constant 0 : i32
    %c0_i32_0 = arith.constant 0 : i32
    %c0_i32_1 = arith.constant 0 : i32
    return %c0_i32, %c0_i32_0 : i32, i32
  }
  func.func @transform_4(%arg0: i32) -> (i32, i32) {
    %c0_i32 = arith.constant 0 : i32
    %c0_i32_0 = arith.constant 0 : i32
    %c0_i32_1 = arith.constant 0 : i32
    return %c0_i32, %c0_i32_0 : i32, i32
  }
  func.func @transform_5(%arg0: i32) -> (i32, i32) {
    %c0_i32 = arith.constant 0 : i32
    %c0_i32_0 = arith.constant 0 : i32
    return %arg0, %c0_i32 : i32, i32
  }
}

</mosaic_0001>

<bundles_post_ra>
// kernel: tpu_custom_call.1
= control target key start
LH: loop header
LB: loop body
LE: loop exit
PB: predicated region body
PF: predicated region fallthrough
CT: control target
= control target key end

     0   :  { %10 = vsyncpa [#allocation3], 0  ;;  %s2094_s0 = inlined_call_operand.hbm [shape: f32[16,128], index: 0, kind: input, shape index: {}]   ;;  %s2095_s1 = inlined_call_operand.hbm [shape: bf16[128,512], index: 1, kind: input, shape index: {}]   ;;  %s2096_s2 = inlined_call_operand.hbm [shape: f32[1,512], index: 2, kind: input, shape index: {}]   ;;  %s2097_s3 = inlined_call_operand.hbm [shape: bf16[512,128], index: 3, kind: input, shape index: {}]   ;;  %s2098_s4 = inlined_call_operand.vmem [shape: f32[1,128], index: 4, kind: input, shape index: {}]   ;;  %s2099_s5 = inlined_call_operand.hbm [shape: f32[16,128], index: 5, kind: output, shape index: {}]  }
   0x1   :  { %12 = vsyncpa [#allocation3 + $0x1], 0 }
   0x2   :  { %13 = vsyncpa [#allocation6], 0 }
   0x3   :  { %14 = vsyncpa [#allocation9], 0 }
   0x4   :  { %15 = vsyncpa [#allocation4], 0 }
   0x5   :  { %17 = vsyncpa [#allocation4 + $0x1], 0  ;;  %s1822_s18 = smov 0   ;;  %s1824_s19 = smov 0  }
   0x6   :  { %s1826_s20 = smov 0   ;;  %s1828_s21 = smov 0  }
   0x7 LB: > { %s175_s24 = sshll.u32 %s2095_s1, 4  ;;  %s1846_s25 = sadd.s32 4294967295, %s1783_s21   ;;  %s1783_s21 = sphi %s1828_s21, %s2110_s21   ;;  %s1779_s20 = sphi %s1826_s20, %s2109_s20   ;;  %s1775_s19 = sphi %s1824_s19, %s2108_s19   ;;  %s1771_s18 = sphi %s1822_s18, %s2107_s18   ;;  %s176_s24 = int_to_ptr.hbm [resolvable:$true] %s175_s24 }
   0x8   : > { %p1158_p0 = scmp.ge.s32.totalorder %s1783_s21, 1  ;;  %p44_p1 = scmp.eq.s32.totalorder %s1846_s25, 0 }
   0x9   : > { %p164_p2 = scmp.lt.s32.totalorder %s1783_s21, 3  ;;  %s1785_s27 = smov [#allocation5]  }
   0xa   : > { %s177_s28 = sshll.u32 %s1785_s27, 4  ;;  %s190_s6 = sshll.u32 %s2096_s2, 4  ;;  %s178_s28 = int_to_ptr.vmem [resolvable:$true] %s177_s28  ;;  %s191_s6 = int_to_ptr.hbm [resolvable:$true] %s190_s6 }
   0xb   : > { %p1851_p3 = pnand %p1158_p0, %p164_p2  ;;  %s201_s10 = sshll.u32 %s2097_s3, 4  ;;  %s202_s10 = int_to_ptr.hbm [resolvable:$true] %s201_s10 }
   0xc   : > { %s1786_s11 = smov [#allocation7]   ;;  %s1787_s13 = smov 256  }
   0xd   : > { %p1515_p4 = pneg %p1851_p3  ;;  %s192_s12 = sshll.u32 %s1786_s11, 4  ;;  %s193_s12 = int_to_ptr.vmem [resolvable:$true] %s192_s12 }
   0xe   : > { %s1788_s14 = smov 16   ;;  %s1789_s15 = smov [#allocation8]  }
   0xf   : > { %p1863_p6 = pnand %p1515_p4, %p44_p1  ;;  %s203_s16 = sshll.u32 %s1789_s15, 4  ;;  %s204_s16 = int_to_ptr.vmem [resolvable:$true] %s203_s16 }
  0x10   : > { %s1790_s17 = smov 64   ;;  %s1791_s22 = smov 4  }
  0x11   : > { %1518 = dma.hbm_to_vmem [thread:$0]  (!%p1863_p6), %s176_s24, 4096, %s178_s28, [#allocation6], %s1787_s13, %s1787_s13, %s1788_s14  }
  0x12   : > { %1521 = dma.hbm_to_vmem [thread:$0]  (!%p1863_p6), %s191_s6, 64, %s193_s12, [#allocation6]  }
  0x13   : > { %1524 = dma.hbm_to_vmem [thread:$0]  (!%p1863_p6), %s202_s10, 4096, %s204_s16, [#allocation9], %s1790_s17, %s1790_s17, %s1791_s22  }
  0x14   : > { %s1157_s23 = sadd.s32 4294967294, %s1783_s21   ;;  %s1878_s24 = sadd.s32 1, %s1783_s21  }
  0x15   : > { %s30_s27 = sadd.s32 1, %s1779_s20  ;;  %s27_s28 = ssub.s32 %s1783_s21, %s1878_s24 }
  0x16   : > { %p37_p7 = scmp.ne.s32.totalorder %s1779_s20, %s1775_s19  ;;  %p28_p8 = scmp.eq.s32.totalorder %s27_s28, 0 }
  0x17   : > { %p38_p9 = scmp.eq.s32.totalorder %s1783_s21, 0  ;;  %p43_p10 = scmp.ne.s32.totalorder %s1775_s19, %s1771_s18 }
  0x18   : > { %p151_p11 = scmp.eq.s32.totalorder %s1846_s25, 1  ;;  %p157_p0 = scmp.eq.s32.totalorder %s1157_s23, 1 }
  0x19   : > { %s1890_s29 = scalar_select %p28_p8, %s1779_s20, %s30_s27  }
  0x1a   : > { %p1894_p12 = por %p44_p1, %p43_p10  ;;  %p1898_p13 = por %p151_p11, %p37_p7 }
  0x1b   : > { %p39_p2 = por %p38_p9, %p37_p7  ;;  %s220_s7 = sand.u32 1, %s1779_s20  }
  0x1c   : > { %p1903_p4 = por %p157_p0, %p43_p10  ;;  %p1536_p6 = scmp.lt.s32.totalorder %s1783_s21, 2 }
  0x1d   : > { %s1163_s9 = sshll.u32 %s220_s7, 3  ;;  %s1164_s10 = sshll.u32 %s1783_s21, 3 }
  0x1e   : > { %s228_s13 = scalar_lea.hbm %s2094_s0, %s1164_s10  ;;  %s224_s15 = scalar_lea.vmem [#allocation2], %s1163_s9 }
  0x1f   : > { %s230_s14 = sshll.u32 %s228_s13, 4  ;;  %s232_s16 = sshll.u32 %s224_s15, 4  ;;  %s231_s14 = int_to_ptr.hbm [resolvable:$true] %s230_s14  ;;  %s233_s16 = int_to_ptr.vmem [resolvable:$true] %s232_s16 }
  0x20   : > { %p1912_p8 = pnand %p1536_p6, %p39_p2  ;;  %s221_s22 = scalar_lea.sflag [#allocation3], %s220_s7 }
  0x21   : > { %s1679_s23 = sshra.s32 %s231_s14, 4  ;;  %s1686_s9 = scalar_lea.hbm %s2094_s0, 16  ;;  %s1680_s23 = int_to_ptr.hbm [resolvable:$true] %s1679_s23 }
  0x22   : > { %s1681_s27 = scalar_lea.hbm %s1680_s23, 8  ;;  %p1683_p9 = pneg %p1912_p8 }
  0x23   : > { %p1682_p7 = scmp.ne.s32.totalorder %s1680_s23, %s1681_s27  ;;  %p1687_p0 = scmp.lt.s32.totalorder %s1680_s23, %s2094_s0 }
  0x24   : > { %p1688_p2 = scmp.lt.s32.totalorder %s1686_s9, %s1681_s27 }
  0x25   : > { %p1684_p10 = pnand %p1683_p9, %p1682_p7 }
  0x26   : > { %p1689_p6 = por %p1688_p2, %p1687_p0 }
  0x27   : > { %p1685_p11 = pneg %p1684_p10 }
  0x29   : > { %p1690_p5 = pnand %p1689_p6, %p1685_p11 }
  0x2b   : > { %1693 = shalt.err (!%p1690_p5)
}
  0x2c   : > { %1528 = dma.hbm_to_vmem [thread:$0]  (!%p1912_p8), %s231_s14, 128, %s233_s16, %s221_s22  }
  0x2d   : > { %241 = sbr.rel (%p1851_p3) target bundleno = 418 (0x1a2), region = 40  ;;  %s1929_s7 = sand.u32 (!%p1851_p3), 1, %s1775_s19  }
  0x2e   : > { %s1166_s13 = sshll.u32 (!%p1851_p3), %s1929_s7, 3  ;;  %s244_s15 = scalar_lea.sflag (!%p1851_p3), [#allocation3], %s1929_s7 }
  0x2f   : > { %s1935_s23 = scalar_lea.vmem (!%p1851_p3), [#allocation2], %s1166_s13 }
  0x32   : > { %1754 = dma.done.wait (%p1894_p12), %s244_s15, 128  }
  0x33   : > { %1756 = vsyncadd (%p1894_p12), %s244_s15, 4294967168 }
  0x34   : > { %1758 = dma.done.wait (%p44_p1), [#allocation6], 4160  }
  0x35   : > { %1760 = vsyncadd (%p44_p1), [#allocation6], 4294963136 }
  0x36   : > { %1762 = dma.done.wait (%p44_p1), [#allocation9], 4096  }
  0x37   : > { %1764 = vsyncadd (%p44_p1), [#allocation9], 4294963200  ;;  %v1229_v0 = vld [vmem:[#allocation5 + $0xe0] sm:$0xf]  ;;  %v1450_v1 = vld [vmem:[#allocation5 + $0xec] sm:$0xf0] }
  0x38   : > { %v1449_v2 = vld [vmem:[#allocation5 + $0xe4] sm:$0xf]  ;;  %v1230_v3 = vor.u32 %v1450_v1, %v1229_v0  ;;  %v1231_v4 = vld [vmem:[#allocation5 + $0xf0] sm:$0xf0]  ;;  %v1295_v5 = vld [vmem:[#allocation5 + $0xe8] sm:$0xf] }
  0x39   : > { %v1482_v6 = vld [vmem:[#allocation5 + $0xf4] sm:$0xf0]  ;;  %v1234_v7 = vor.u32 %v1449_v2, %v1231_v4  ;;  %v1481_v9 = vld [vmem:[#allocation5 + $0xec] sm:$0xf]  ;;  %v1297_v10 = vld [vmem:[#allocation5 + $0xf8] sm:$0xf0] }
  0x3a   : > { %v1296_v8 = vor.u32 %v1482_v6, %v1295_v5  ;;  %v1221_v11 = vld [vmem:[#allocation5 + $0xc0] sm:$0xf]  ;;  %394 = vmatpush.bf16.msra.mxu0 %v1230_v3  ;;  %v1300_v12 = vor.u32 %v1481_v9, %v1297_v10  ;;  %v1448_v13 = vld [vmem:[#allocation5 + $0xcc] sm:$0xf0]  ;;  %v1447_v14 = vld [vmem:[#allocation5 + $0xc4] sm:$0xf] }
  0x3b   : > { %v1223_v15 = vld [vmem:[#allocation5 + $0xd0] sm:$0xf0]  ;;  %407 = vmatpush.bf16.msra.mxu1 %v1234_v7  ;;  %v1222_v16 = vor.u32 %v1448_v13, %v1221_v11  ;;  %v1287_v18 = vld [vmem:[#allocation5 + $0xc8] sm:$0xf]  ;;  %v1480_v19 = vld [vmem:[#allocation5 + $0xd4] sm:$0xf0] }
  0x3c   : > { %644 = vmatpush.bf16.msra.mxu2 %v1296_v8  ;;  %v1226_v17 = vor.u32 %v1447_v14, %v1223_v15  ;;  %v1479_v20 = vld [vmem:[#allocation5 + $0xcc] sm:$0xf]  ;;  %657 = vmatpush.bf16.msra.mxu3 %v1300_v12  ;;  %v1288_v21 = vor.u32 %v1480_v19, %v1287_v18  ;;  %v1289_v22 = vld [vmem:[#allocation5 + $0xd8] sm:$0xf0]  ;;  %v1213_v23 = vld [vmem:[#allocation5 + $0xa0] sm:$0xf] }
  0x3d   : > { %v1446_v24 = vld [vmem:[#allocation5 + $0xac] sm:$0xf0]  ;;  %v1292_v25 = vor.u32 %v1479_v20, %v1289_v22  ;;  %v1445_v26 = vld [vmem:[#allocation5 + $0xa4] sm:$0xf]  ;;  %v1215_v27 = vld [vmem:[#allocation5 + $0xb0] sm:$0xf0] }
  0x3e   : > { %v1279_v28 = vld [vmem:[#allocation5 + $0xa8] sm:$0xf]  ;;  %395 = vmatpush.bf16.msra.mxu0 %v1222_v16  ;;  %v1214_v29 = vor.u32 %v1446_v24, %v1213_v23  ;;  %v1478_v30 = vld [vmem:[#allocation5 + $0xb4] sm:$0xf0]  ;;  %v1477_v31 = vld [vmem:[#allocation5 + $0xac] sm:$0xf]  ;;  %v1218_v33 = vor.u32 %v1445_v26, %v1215_v27 }
  0x3f   : > { %v1281_v32 = vld [vmem:[#allocation5 + $0xb8] sm:$0xf0]  ;;  %408 = vmatpush.bf16.msra.mxu1 %v1226_v17  ;;  %v1280_v34 = vor.u32 %v1478_v30, %v1279_v28  ;;  %v1205_v35 = vld [vmem:[#allocation5 + $0x80] sm:$0xf]  ;;  %v1444_v36 = vld [vmem:[#allocation5 + $0x8c] sm:$0xf0] }
  0x40   : > { %645 = vmatpush.bf16.msra.mxu2 %v1288_v21  ;;  %v1443_v37 = vld [vmem:[#allocation5 + $0x84] sm:$0xf]  ;;  %658 = vmatpush.bf16.msra.mxu3 %v1292_v25  ;;  %v1284_v38 = vor.u32 %v1477_v31, %v1281_v32  ;;  %v1207_v39 = vld [vmem:[#allocation5 + $0x90] sm:$0xf0]  ;;  %v1271_v40 = vld [vmem:[#allocation5 + $0x88] sm:$0xf]  ;;  %v1206_v44 = vor.u32 %v1444_v36, %v1205_v35 }
  0x41   : > { %v1476_v41 = vld [vmem:[#allocation5 + $0x94] sm:$0xf0]  ;;  %v1475_v42 = vld [vmem:[#allocation5 + $0x8c] sm:$0xf]  ;;  %v1273_v43 = vld [vmem:[#allocation5 + $0x98] sm:$0xf0]  ;;  %v1210_v45 = vor.u32 %v1443_v37, %v1207_v39 }
  0x42   : > { %396 = vmatpush.bf16.msra.mxu0 %v1214_v29  ;;  %v1272_v46 = vor.u32 %v1476_v41, %v1271_v40  ;;  %v1197_v47 = vld [vmem:[#allocation5 + $0x60] sm:$0xf]  ;;  %v1442_v48 = vld [vmem:[#allocation5 + $0x6c] sm:$0xf0]  ;;  %v1441_v49 = vld [vmem:[#allocation5 + $0x64] sm:$0xf]  ;;  %v1276_v50 = vor.u32 %v1475_v42, %v1273_v43 }
  0x43   : > { %409 = vmatpush.bf16.msra.mxu1 %v1218_v33  ;;  %v1199_v51 = vld [vmem:[#allocation5 + $0x70] sm:$0xf0]  ;;  %v1263_v52 = vld [vmem:[#allocation5 + $0x68] sm:$0xf]  ;;  %v1474_v53 = vld [vmem:[#allocation5 + $0x74] sm:$0xf0]  ;;  %v1198_v56 = vor.u32 %v1442_v48, %v1197_v47 }
  0x44   : > { %646 = vmatpush.bf16.msra.mxu2 %v1280_v34  ;;  %659 = vmatpush.bf16.msra.mxu3 %v1284_v38  ;;  %v1473_v54 = vld [vmem:[#allocation5 + $0x6c] sm:$0xf]  ;;  %v1265_v55 = vld [vmem:[#allocation5 + $0x78] sm:$0xf0]  ;;  %v1202_v57 = vor.u32 %v1441_v49, %v1199_v51  ;;  %v1264_v58 = vor.u32 %v1474_v53, %v1263_v52  ;;  %v1189_v59 = vld [vmem:[#allocation5 + $0x40] sm:$0xf] }
  0x45   : > { %v1440_v60 = vld [vmem:[#allocation5 + $0x4c] sm:$0xf0]  ;;  %v1439_v61 = vld [vmem:[#allocation5 + $0x44] sm:$0xf]  ;;  %v1268_v62 = vor.u32 %v1473_v54, %v1265_v55  ;;  %v1191_v63 = vld [vmem:[#allocation5 + $0x50] sm:$0xf0] }
  0x46   : > { %397 = vmatpush.bf16.msra.mxu0 %v1206_v44  ;;  %v1255_v0 = vld [vmem:[#allocation5 + $0x48] sm:$0xf]  ;;  %v1472_v1 = vld [vmem:[#allocation5 + $0x54] sm:$0xf0]  ;;  %v1471_v2 = vld [vmem:[#allocation5 + $0x4c] sm:$0xf]  ;;  %v1190_v4 = vor.u32 %v1440_v60, %v1189_v59  ;;  %v1194_v5 = vor.u32 %v1439_v61, %v1191_v63 }
  0x47   : > { %410 = vmatpush.bf16.msra.mxu1 %v1210_v45  ;;  %v1257_v3 = vld [vmem:[#allocation5 + $0x58] sm:$0xf0]  ;;  %v1256_v6 = vor.u32 %v1472_v1, %v1255_v0  ;;  %v1181_v7 = vld [vmem:[#allocation5 + $0x20] sm:$0xf]  ;;  %v1438_v8 = vld [vmem:[#allocation5 + $0x2c] sm:$0xf0] }
  0x48   : > { %647 = vmatpush.bf16.msra.mxu2 %v1272_v46  ;;  %660 = vmatpush.bf16.msra.mxu3 %v1276_v50  ;;  %v1437_v9 = vld [vmem:[#allocation5 + $0x24] sm:$0xf]  ;;  %v1260_v10 = vor.u32 %v1471_v2, %v1257_v3  ;;  %v1183_v11 = vld [vmem:[#allocation5 + $0x30] sm:$0xf0]  ;;  %v1247_v12 = vld [vmem:[#allocation5 + $0x28] sm:$0xf]  ;;  %v1182_v16 = vor.u32 %v1438_v8, %v1181_v7 }
  0x49   : > { %v1470_v13 = vld [vmem:[#allocation5 + $0x34] sm:$0xf0]  ;;  %v1469_v14 = vld [vmem:[#allocation5 + $0x2c] sm:$0xf]  ;;  %v1249_v15 = vld [vmem:[#allocation5 + $0x38] sm:$0xf0]  ;;  %v1186_v17 = vor.u32 %v1437_v9, %v1183_v11 }
  0x4a   : > { %398 = vmatpush.bf16.msra.mxu0 %v1198_v56  ;;  %v1248_v18 = vor.u32 %v1470_v13, %v1247_v12  ;;  %v1173_v19 = vld [vmem:[#allocation5] sm:$0xf]  ;;  %v1436_v20 = vld [vmem:[#allocation5 + $0xc] sm:$0xf0]  ;;  %v1435_v21 = vld [vmem:[#allocation5 + $0x4] sm:$0xf]  ;;  %v1252_v22 = vor.u32 %v1469_v14, %v1249_v15 }
  0x4b   : > { %411 = vmatpush.bf16.msra.mxu1 %v1202_v57  ;;  %v1175_v23 = vld [vmem:[#allocation5 + $0x10] sm:$0xf0]  ;;  %v1239_v24 = vld [vmem:[#allocation5 + $0x8] sm:$0xf]  ;;  %v1468_v25 = vld [vmem:[#allocation5 + $0x14] sm:$0xf0]  ;;  %v1174_v28 = vor.u32 %v1436_v20, %v1173_v19 }
  0x4c   : > { %648 = vmatpush.bf16.msra.mxu2 %v1264_v58  ;;  %661 = vmatpush.bf16.msra.mxu3 %v1268_v62  ;;  %v1467_v26 = vld [vmem:[#allocation5 + $0xc] sm:$0xf]  ;;  %v1241_v27 = vld [vmem:[#allocation5 + $0x18] sm:$0xf0]  ;;  %v1178_v30 = vor.u32 %v1435_v21, %v1175_v23  ;;  %v1240_v31 = vor.u32 %v1468_v25, %v1239_v24  ;;  %v308_v34 = vld [vmem:[#allocation7] sm:$0x3] }
  0x4d   : > { %v290_v29 = vld [vmem:[%s1935_s23] sm:$0xff]  ;;  %v1244_v32 = vor.u32 %v1467_v26, %v1241_v27  ;;  %v310_v35 = vperm.slane %v308_v34, 0  ;;  %v311_v36 = vperm.slane %v308_v34, 1  ;;  %v558_v40 = vld [vmem:[#allocation7 + $0x2] sm:$0x3]  ;;  %v1455_v25 = vld [vmem:[#allocation8 + $0x20] sm:$0xff] }
  0x4e   : > { %399 = vmatpush.bf16.msra.mxu0 %v1190_v4  ;;  %v291_v33 = vpack.c.bf16 %v290_v29, %v290_v29  ;;  %v560_v44 = vperm.slane %v558_v40, 0  ;;  %v1458_v45 = vld [vmem:[#allocation8 + $0x38] sm:$0xff]  ;;  %v561_v48 = vperm.slane %v558_v40, 1  ;;  %v1457_v56 = vld [vmem:[#allocation8 + $0x30] sm:$0xff]  ;;  %v1456_v11 = vld [vmem:[#allocation8 + $0x28] sm:$0xff]  ;;  %s1432_s26 = sshll.u32 %s1846_s25, 3 }
  0x4f   : > { %412 = vmatpush.bf16.msra.mxu1 %v1194_v5  ;;  %v1466_v46 = vld [vmem:[#allocation8 + $0x78] sm:$0xff]  ;;  %v1465_v57 = vld [vmem:[#allocation8 + $0x70] sm:$0xff]  ;;  %v1464_v12 = vld [vmem:[#allocation8 + $0x68] sm:$0xff]  ;;  %s1053_s16 = scalar_lea.hbm %s2099_s5, %s1432_s26  ;;  %s289_s27 = scalar_lea.vmem [#allocation10], %s1166_s13 }
  0x50   : > { %649 = vmatpush.bf16.msra.mxu2 %v1256_v6  ;;  %662 = vmatpush.bf16.msra.mxu3 %v1260_v10  ;;  %v1490_v0 = vld [vmem:[#allocation8 + $0xb8] sm:$0xff]  ;;  %v1489_v15 = vld [vmem:[#allocation8 + $0xb0] sm:$0xff]  ;;  %v1463_v26 = vld [vmem:[#allocation8 + $0x60] sm:$0xff]  ;;  %s1055_s28 = sshll.u32 %s289_s27, 4  ;;  %s1057_s10 = sshll.u32 %s1053_s16, 4  ;;  %s1056_s28 = int_to_ptr.vmem [resolvable:$true] %s1055_s28  ;;  %s1058_s10 = int_to_ptr.hbm [resolvable:$true] %s1057_s10 }
  0x51   : > { %v1498_v6 = vld [vmem:[#allocation8 + $0xf8] sm:$0xff]  ;;  %v1488_v34 = vld [vmem:[#allocation8 + $0xa8] sm:$0xff]  ;;  %s1043_s25 = scalar_lea.sflag [#allocation4], %s1929_s7  ;;  %s1723_s9 = sshra.s32 %s1058_s10, 4  ;;  %s1724_s9 = int_to_ptr.hbm [resolvable:$true] %s1723_s9 }
  0x52   : > { %400 = vmatpush.bf16.msra.mxu0 %v1182_v16  ;;  %v1497_v16 = vld [vmem:[#allocation8 + $0xf0] sm:$0xff]  ;;  %s1725_s11 = scalar_lea.hbm %s1724_s9, 8  ;;  %s1729_s13 = scalar_lea.hbm %s2099_s5, 16 }
  0x53   : > { %413 = vmatpush.bf16.msra.mxu1 %v1186_v17  ;;  %p1726_p1 = scmp.ne.s32.totalorder %s1724_s9, %s1725_s11  ;;  %p1730_p12 = scmp.lt.s32.totalorder %s1724_s9, %s2099_s5 }
  0x54   : > { %650 = vmatpush.bf16.msra.mxu2 %v1248_v18  ;;  %663 = vmatpush.bf16.msra.mxu3 %v1252_v22  ;;  %p1731_p8 = scmp.lt.s32.totalorder %s1729_s13, %s1725_s11 }
  0x55   : > { %p1727_p3 = pnand %p1726_p1, %p1898_p13 }
  0x56   : > { %401 = vmatpush.bf16.msra.mxu0 %v1174_v28  ;;  %p1732_p7 = por %p1731_p8, %p1730_p12 }
  0x57   : > { %414 = vmatpush.bf16.msra.mxu1 %v1178_v30  ;;  %p1728_p5 = pneg %p1727_p3 }
  0x58   : > { %651 = vmatpush.bf16.msra.mxu2 %v1240_v31  ;;  %664 = vmatpush.bf16.msra.mxu3 %v1244_v32 }
  0x59   : > { %402 = vmatmul.bf16.vlgmr.msra.gmra.mxu0 %v291_v33  ;;  %p1733_p9 = pnand %p1732_p7, %p1728_p5 }
  0x5a   : > { %415 = vmatmul.bf16.vlgmr.msra.gmra.mxu1 %v291_v33  ;;  %888 = vmatpush.bf16.msrb.mxu0 %v1490_v0 }
  0x5b   : > { %652 = vmatmul.bf16.vlgmr.msra.gmra.mxu2 %v291_v33  ;;  %665 = vmatmul.bf16.vlgmr.msra.gmra.mxu3 %v291_v33 }
  0x5c   : > { %1010 = vmatpush.bf16.msrb.mxu2 %v1458_v45  ;;  %1023 = vmatpush.bf16.msrb.mxu3 %v1466_v46 }
  0x5d   : > { %901 = vmatpush.bf16.msrb.mxu1 %v1498_v6  ;;  %v1461_v6 = vld [vmem:[#allocation8 + $0x50] sm:$0xff] }
  0x5e   : > { %889 = vmatpush.bf16.msrb.mxu0 %v1489_v15 }
  0x60   : > { %1011 = vmatpush.bf16.msrb.mxu2 %v1457_v56  ;;  %1024 = vmatpush.bf16.msrb.mxu3 %v1465_v57 }
  0x61   : > { %902 = vmatpush.bf16.msrb.mxu1 %v1497_v16 }
  0x62   : > { %890 = vmatpush.bf16.msrb.mxu0 %v1488_v34  ;;  %v1484_v34 = vld [vmem:[#allocation8 + $0x88] sm:$0xff] }
  0x64   : > { %1012 = vmatpush.bf16.msrb.mxu2 %v1456_v11  ;;  %1025 = vmatpush.bf16.msrb.mxu3 %v1464_v12  ;;  %v1486_v12 = vld [vmem:[#allocation8 + $0x98] sm:$0xff] }
  0x68   : > { %1013 = vmatpush.bf16.msrb.mxu2 %v1455_v25  ;;  %1026 = vmatpush.bf16.msrb.mxu3 %v1463_v26  ;;  %v1485_v25 = vld [vmem:[#allocation8 + $0x90] sm:$0xff] }
  0x69   : > { %v1493_v26 = vld [vmem:[#allocation8 + $0xd0] sm:$0xff] }
  0xd6   : > { %v403_v37 = vpop.f32.mrf.mxu0 }
  0xd7   : > { %v1950_v38 = vadd.f32 %v403_v37, %v310_v35  ;;  %v416_v39 = vpop.f32.mrf.mxu1  ;;  %v1496_v35 = vld [vmem:[#allocation8 + $0xe8] sm:$0xff] }
  0xd8   : > { %v1952_v41 = vadd.f32 %v416_v39, %v311_v36  ;;  %903 = vmatpush.bf16.msrb.mxu1 %v1496_v35 }
  0xd9   : > { %v1955_v42 = vmul.f32 0.70710677, %v1950_v38 }
  0xda   : > { %v1958_v43 = vmul.f32 0.70710677, %v1952_v41 }
  0xdb   : > { %v424_v47 = vmul.f32 %v1955_v42, %v1955_v42 }
  0xdc   : > { %v464_v49 = vmul.f32 %v1958_v43, %v1958_v43 }
  0xdd   : > { %v1964_v50 = vmin.f32 %v424_v47, 16.0 }
  0xde   : > { %v653_v51 = vpop.f32.mrf.mxu2  ;;  %v1966_v52 = vmin.f32 %v464_v49, 16.0  ;;  %v666_v54 = vpop.f32.mrf.mxu3  ;;  %v1454_v49 = vld [vmem:[#allocation8 + $0x18] sm:$0xff] }
  0xdf   : > { %v1968_v53 = vadd.f32 %v653_v51, %v560_v44  ;;  %v405_v55 = vpop.f32.mrf.mxu0  ;;  %v426_v58 = vmul.f32 2.1237322e-06, %v1964_v50  ;;  %v437_v59 = vmul.f32 3.8918573e-05, %v1964_v50  ;;  %v1972_v60 = vadd.f32 %v666_v54, %v561_v48  ;;  %v418_v61 = vpop.f32.mrf.mxu1  ;;  %v1462_v51 = vld [vmem:[#allocation8 + $0x58] sm:$0xff]  ;;  %1014 = vmatpush.bf16.msrb.mxu2 %v1454_v49 }
  0xe0   : > { %v466_v62 = vmul.f32 2.1237322e-06, %v1966_v52  ;;  %v477_v63 = vmul.f32 3.8918573e-05, %v1966_v52  ;;  %1027 = vmatpush.bf16.msrb.mxu3 %v1462_v51 }
  0xe1   : > { %v427_v1 = vadd.f32 0.00028619796, %v426_v58  ;;  %v438_v2 = vadd.f32 0.001143296, %v437_v59  ;;  %v1977_v3 = vmul.f32 0.70710677, %v1968_v53 }
  0xe2   : > { %v467_v4 = vadd.f32 0.00028619796, %v466_v62  ;;  %v478_v5 = vadd.f32 0.001143296, %v477_v63  ;;  %v1984_v10 = vmul.f32 0.70710677, %v1972_v60 }
  0xe3   : > { %v428_v7 = vmul.f32 %v427_v1, %v1964_v50  ;;  %v439_v8 = vmul.f32 %v438_v2, %v1964_v50  ;;  %v674_v9 = vmul.f32 %v1977_v3, %v1977_v3  ;;  %v1487_v58 = vld [vmem:[#allocation8 + $0xa0] sm:$0xff] }
  0xe4   : > { %v468_v13 = vmul.f32 %v467_v4, %v1966_v52  ;;  %v479_v14 = vmul.f32 %v478_v5, %v1966_v52  ;;  %v714_v20 = vmul.f32 %v1984_v10, %v1984_v10  ;;  %v1495_v59 = vld [vmem:[#allocation8 + $0xe0] sm:$0xff]  ;;  %891 = vmatpush.bf16.msrb.mxu0 %v1487_v58  ;;  %v1453_v5 = vld [vmem:[#allocation8 + $0x10] sm:$0xff]  ;;  %1028 = vmatpush.bf16.msrb.mxu3 %v1461_v6 }
  0xe5   : > { %v429_v17 = vadd.f32 0.0036580483, %v428_v7  ;;  %v440_v18 = vadd.f32 0.014752088, %v439_v8  ;;  %v1988_v19 = vmin.f32 %v674_v9, 16.0  ;;  %904 = vmatpush.bf16.msrb.mxu1 %v1495_v59  ;;  %1015 = vmatpush.bf16.msrb.mxu2 %v1453_v5  ;;  %v1491_v59 = vld [vmem:[#allocation8 + $0xc0] sm:$0xff] }
  0xe6   : > { %v655_v21 = vpop.f32.mrf.mxu2  ;;  %v469_v22 = vadd.f32 0.0036580483, %v468_v13  ;;  %v480_v23 = vadd.f32 0.014752088, %v479_v14  ;;  %v668_v24 = vpop.f32.mrf.mxu3  ;;  %v1998_v33 = vmin.f32 %v714_v20, 16.0  ;;  %v1494_v13 = vld [vmem:[#allocation8 + $0xd8] sm:$0xff] }
  0xe7   : > { %v430_v27 = vmul.f32 %v429_v17, %v1964_v50  ;;  %v441_v28 = vmul.f32 %v440_v18, %v1964_v50  ;;  %v676_v29 = vmul.f32 2.1237322e-06, %v1988_v19  ;;  %v687_v30 = vmul.f32 3.8918573e-05, %v1988_v19  ;;  %v1452_v20 = vld [vmem:[#allocation8 + $0x8] sm:$0xff] }
  0xe8   : > { %v470_v31 = vmul.f32 %v469_v22, %v1966_v52  ;;  %v481_v32 = vmul.f32 %v480_v23, %v1966_v52  ;;  %v716_v56 = vmul.f32 2.1237322e-06, %v1998_v33  ;;  %v727_v57 = vmul.f32 3.8918573e-05, %v1998_v33  ;;  %892 = vmatpush.bf16.msrb.mxu0 %v1486_v12  ;;  %v1460_v23 = vld [vmem:[#allocation8 + $0x48] sm:$0xff] }
  0xe9   : > { %v431_v36 = vadd.f32 0.05243302, %v430_v27  ;;  %v442_v37 = vadd.f32 0.112945676, %v441_v28  ;;  %v677_v39 = vadd.f32 0.00028619796, %v676_v29  ;;  %905 = vmatpush.bf16.msrb.mxu1 %v1494_v13  ;;  %1016 = vmatpush.bf16.msrb.mxu2 %v1452_v20 }
  0xea   : > { %v471_v40 = vadd.f32 0.05243302, %v470_v31  ;;  %v482_v44 = vadd.f32 0.112945676, %v481_v32  ;;  %v688_v45 = vadd.f32 0.001143296, %v687_v30  ;;  %1029 = vmatpush.bf16.msrb.mxu3 %v1460_v23 }
  0xeb   : > { %v432_v46 = vmul.f32 %v431_v36, %v1964_v50  ;;  %v443_v47 = vmul.f32 %v442_v37, %v1964_v50  ;;  %v678_v48 = vmul.f32 %v677_v39, %v1988_v19  ;;  %v717_v9 = vadd.f32 0.00028619796, %v716_v56  ;;  %v1459_v32 = vld [vmem:[#allocation8 + $0x40] sm:$0xff]  ;;  %v1492_v39 = vld [vmem:[#allocation8 + $0xc8] sm:$0xff] }
  0xec   : > { %v483_v54 = vmul.f32 %v482_v44, %v1966_v52  ;;  %v689_v55 = vmul.f32 %v688_v45, %v1988_v19  ;;  %v472_v62 = vmul.f32 %v471_v40, %v1966_v52  ;;  %v728_v11 = vadd.f32 0.001143296, %v727_v57  ;;  %893 = vmatpush.bf16.msrb.mxu0 %v1485_v25 }
  0xed   : > { %v444_v61 = vadd.f32 0.4994258, %v443_v47  ;;  %v433_v1 = vadd.f32 0.18741608, %v432_v46  ;;  %v679_v4 = vadd.f32 0.0036580483, %v678_v48  ;;  %v718_v24 = vmul.f32 %v717_v9, %v1998_v33  ;;  %906 = vmatpush.bf16.msrb.mxu1 %v1493_v26 }
  0xee   : > { %v484_v63 = vadd.f32 0.4994258, %v483_v54  ;;  %v690_v0 = vadd.f32 0.014752088, %v689_v55  ;;  %v473_v15 = vadd.f32 0.18741608, %v472_v62  ;;  %v729_v18 = vmul.f32 %v728_v11, %v1998_v33  ;;  %1030 = vmatpush.bf16.msrb.mxu3 %v1459_v32 }
  0xef   : > { %v445_v2 = vmul.f32 %v444_v61, %v1964_v50  ;;  %v434_v21 = vmul.f32 %v433_v1, %v1964_v50  ;;  %v680_v22 = vmul.f32 %v679_v4, %v1988_v19  ;;  %v1451_v50 = vld [vmem:[#allocation8] sm:$0xff]  ;;  %v719_v36 = vadd.f32 0.0036580483, %v718_v24 }
  0xf0   : > { %v485_v7 = vmul.f32 %v484_v63, %v1966_v52  ;;  %v691_v8 = vmul.f32 %v690_v0, %v1988_v19  ;;  %v474_v27 = vmul.f32 %v473_v15, %v1966_v52  ;;  %v730_v29 = vadd.f32 0.014752088, %v729_v18  ;;  %1017 = vmatpush.bf16.msrb.mxu2 %v1451_v50  ;;  %894 = vmatpush.bf16.msrb.mxu0 %v1484_v34  ;;  %v1483_v47 = vld [vmem:[#allocation8 + $0x80] sm:$0xff] }
  0xf1   : > { %v2011_v14 = vadd.f32 1.0, %v445_v2  ;;  %v435_v30 = vadd.f32 1.1283791, %v434_v21  ;;  %v681_v31 = vadd.f32 0.05243302, %v680_v22  ;;  %v720_v58 = vmul.f32 %v719_v36, %v1998_v33  ;;  %907 = vmatpush.bf16.msrb.mxu1 %v1492_v39 }
  0xf2   : > { %v2013_v16 = vadd.f32 1.0, %v485_v7  ;;  %v692_v17 = vadd.f32 0.112945676, %v691_v8  ;;  %v731_v37 = vmul.f32 %v730_v29, %v1998_v33  ;;  %v475_v45 = vadd.f32 1.1283791, %v474_v27 }
  0xf3   : > { %1581 = vrcp.f32 %v2011_v14  ;;  %v436_v48 = vmul.f32 %v435_v30, %v1955_v42  ;;  %v682_v51 = vmul.f32 %v681_v31, %v1988_v19  ;;  %v456_v56 = vand.u32 2147483647, %v2011_v14 }
  0xf4   : > { %1583 = vrcp.f32 %v2013_v16  ;;  %v693_v28 = vmul.f32 %v692_v17, %v1988_v19  ;;  %v732_v54 = vadd.f32 0.112945676, %v731_v37  ;;  %v458_v61 = vand.u32 2147483648, %v2011_v14  ;;  %895 = vmatpush.bf16.msrb.mxu0 %v1483_v47 }
  0xf5   : > { %v496_v63 = vand.u32 2147483647, %v2013_v16  ;;  %v498_v1 = vand.u32 2147483648, %v2013_v16  ;;  %v683_v4 = vadd.f32 0.18741608, %v682_v51  ;;  %vm452_vm2 = vweird.f32 %v2011_v14  ;;  %908 = vmatpush.bf16.msrb.mxu1 %v1491_v59 }
  0xf6   : > { %v694_v35 = vadd.f32 0.4994258, %v693_v28  ;;  %v733_v42 = vmul.f32 %v732_v54, %v1998_v33  ;;  %v476_v7 = vmul.f32 %v475_v45, %v1958_v43  ;;  %v721_v8 = vadd.f32 0.05243302, %v720_v58 }
  0xf7   : > { %v459_v9 = vor.u32 1.1754944e-38, %v458_v61  ;;  %vm492_vm4 = vweird.f32 %v2013_v16  ;;  %vm457_vm5 = vcmp.eq.f32.partialorder %v456_v56, 8.507059e+37  ;;  %vm497_vm7 = vcmp.eq.f32.partialorder %v496_v63, 8.507059e+37 }
  0xf8   : > { %v695_v46 = vmul.f32 %v694_v35, %v1988_v19  ;;  %v734_v5 = vadd.f32 0.4994258, %v733_v42  ;;  %v499_v15 = vor.u32 1.1754944e-38, %v498_v1  ;;  %v722_v23 = vmul.f32 %v721_v8, %v1998_v33 }
  0xf9   : > { %v1582_v40 = vpop.eup %1581  ;;  %v420_v25 = vmul.f32 0.5, %v1950_v38  ;;  %v421_v50 = vmul.f32 0.5, %v1952_v41  ;;  %v670_v58 = vmul.f32 0.5, %v1968_v53 }
  0xfa   : > { %v1584_v44 = vpop.eup %1583  ;;  %v448_v52 = vmul.f32 %v1582_v40, %v2011_v14  ;;  %v2030_v57 = vadd.f32 1.0, %v695_v46  ;;  %vm453_vm0 = vweird.f32 %v1582_v40  ;;  %v735_v12 = vmul.f32 %v734_v5, %v1998_v33 }
  0xfb   : > { %v488_v49 = vmul.f32 %v1584_v44, %v2013_v16  ;;  %vm493_vm1 = vweird.f32 %v1584_v44  ;;  %vm454_vm3 = vmor %vm452_vm2, %vm453_vm0  ;;  %v684_v14 = vmul.f32 %v683_v4, %v1988_v19  ;;  %v723_v31 = vadd.f32 0.18741608, %v722_v23 }
  0xfc   : > { %v449_v55 = vsub.f32 1.0, %v448_v52  ;;  %1585 = vrcp.f32 %v2030_v57  ;;  %vm494_vm6 = vmor %vm492_vm4, %vm493_vm1  ;;  %v736_v43 = vadd.f32 1.0, %v735_v12  ;;  %v706_v19 = vand.u32 2147483647, %v2030_v57 }
  0xfd   : > { %v489_v62 = vsub.f32 1.0, %v488_v49  ;;  %v685_v26 = vadd.f32 1.1283791, %v684_v14  ;;  %v708_v30 = vand.u32 2147483648, %v2030_v57  ;;  %vm702_vm9 = vweird.f32 %v2030_v57 }
  0xfe   : > { %v450_v0 = vmul.f32 %v1582_v40, %v449_v55  ;;  %1587 = vrcp.f32 %v736_v43  ;;  %v724_v41 = vmul.f32 %v723_v31, %v1998_v33  ;;  %vm707_vm11 = vcmp.eq.f32.partialorder %v706_v19, 8.507059e+37 }
  0xff   : > { %v490_v2 = vmul.f32 %v1584_v44, %v489_v62  ;;  %v748_v55 = vand.u32 2147483648, %v736_v43  ;;  %vm742_vm13 = vweird.f32 %v736_v43  ;;  %v671_v5 = vmul.f32 0.5, %v1972_v60 }
 0x100   : > { %v451_v6 = vadd.f32 %v1582_v40, %v450_v0  ;;  %v725_v54 = vadd.f32 1.1283791, %v724_v41 }
 0x101   : > { %v491_v11 = vadd.f32 %v1584_v44, %v490_v2  ;;  %v749_v61 = vor.u32 1.1754944e-38, %v748_v55 }
 0x102   : > { %v455_v13 = vsel %vm454_vm3, %v1582_v40, %v451_v6  ;;  %v1586_v20 = vpop.eup %1585  ;;  %v686_v40 = vmul.f32 %v685_v26, %v1977_v3  ;;  %v726_v62 = vmul.f32 %v725_v54, %v1984_v10 }
 0x103   : > { %v460_v17 = vsel %vm457_vm5, %v459_v9, %v455_v13  ;;  %v495_v18 = vsel %vm494_vm6, %v1584_v44, %v491_v11  ;;  %v698_v16 = vmul.f32 %v1586_v20, %v2030_v57  ;;  %vm703_vm8 = vweird.f32 %v1586_v20 }
 0x104   : > { %v461_v21 = vmul.f32 %v460_v17, %v436_v48  ;;  %v500_v22 = vsel %vm497_vm7, %v499_v15, %v495_v18  ;;  %v1588_v39 = vpop.eup %1587  ;;  %vm704_vm10 = vmor %vm702_vm9, %vm703_vm8  ;;  %v709_v44 = vor.u32 1.1754944e-38, %v708_v30  ;;  %v746_v57 = vand.u32 2147483647, %v736_v43  ;;  %v1580_v18 = vld [vmem:[%s2098_s4] ss:$0 sm:$0xff] }
 0x105   : > { %v501_v24 = vmul.f32 %v500_v22, %v476_v7  ;;  %v699_v27 = vsub.f32 1.0, %v698_v16  ;;  %v738_v45 = vmul.f32 %v1588_v39, %v736_v43  ;;  %vm743_vm12 = vweird.f32 %v1588_v39 }
 0x106   : > { %v1235_v28 = vclamps-f32 %v461_v21, 1.0  ;;  %vm744_vm14 = vmor %vm742_vm13, %vm743_vm12  ;;  %vm747_vm15 = vcmp.eq.f32.partialorder %v746_v57, 8.507059e+37 }
 0x107   : > { %v1236_v29 = vclamps-f32 %v501_v24, 1.0  ;;  %v700_v32 = vmul.f32 %v1586_v20, %v699_v27  ;;  %v739_v51 = vsub.f32 1.0, %v738_v45 }
 0x108   : > { %v504_v34 = vadd.f32 1.0, %v1235_v28 }
 0x109   : > { %v505_v35 = vadd.f32 1.0, %v1236_v29  ;;  %v701_v36 = vadd.f32 %v1586_v20, %v700_v32  ;;  %v740_v56 = vmul.f32 %v1588_v39, %v739_v51 }
 0x10a   : > { %v506_v38 = vmul.f32 %v504_v34, %v420_v25 }
 0x10b   : > { %v507_v37 = vmul.f32 %v505_v35, %v421_v50  ;;  %v705_v52 = vsel %vm704_vm10, %v1586_v20, %v701_v36  ;;  %v741_v59 = vadd.f32 %v1588_v39, %v740_v56 }
 0x10c   : > { %v508_v46 = vpack.c.bf16 %v506_v38, %v506_v38  ;;  %v710_v47 = vsel %vm707_vm11, %v709_v44, %v705_v52 }
 0x10d   : > { %v509_v48 = vpack.c.bf16 %v507_v37, %v507_v37  ;;  %v711_v49 = vmul.f32 %v710_v47, %v686_v40  ;;  %v745_v63 = vsel %vm744_vm14, %v1588_v39, %v741_v59 }
 0x10e   : > { %1018 = vmatmul.bf16.vlgmr.msrb.gmra.mxu2 %v508_v46  ;;  %v750_v0 = vsel %vm747_vm15, %v749_v61, %v745_v63 }
 0x10f   : > { %1031 = vmatmul.bf16.vlgmr.msrb.gmra.mxu3 %v509_v48  ;;  %v1301_v3 = vclamps-f32 %v711_v49, 1.0  ;;  %v751_v1 = vmul.f32 %v750_v0, %v726_v62 }
 0x111   : > { %v754_v33 = vadd.f32 1.0, %v1301_v3  ;;  %v1302_v4 = vclamps-f32 %v751_v1, 1.0 }
 0x113   : > { %v756_v42 = vmul.f32 %v754_v33, %v670_v58  ;;  %v755_v6 = vadd.f32 1.0, %v1302_v4 }
 0x115   : > { %v758_v2 = vpack.c.bf16 %v756_v42, %v756_v42  ;;  %v757_v53 = vmul.f32 %v755_v6, %v671_v5 }
 0x117   : > { %896 = vmatmul.bf16.vlgmr.msrb.gmra.mxu0 %v758_v2  ;;  %v759_v7 = vpack.c.bf16 %v757_v53, %v757_v53 }
 0x119   : > { %909 = vmatmul.bf16.vlgmr.msrb.gmra.mxu1 %v759_v7 }
 0x191   : > { %v1019_v8 = vpop.f32.mrf.mxu2 }
 0x192   : > { %v1032_v9 = vpop.f32.mrf.mxu3 }
 0x194   : > { %v897_v11 = vpop.f32.mrf.mxu0 }
 0x196   : > { %v910_v13 = vpop.f32.mrf.mxu1 }
 0x197   : > { %v911_v17 = vadd.f32 %v910_v13, %v897_v11 }
 0x199   : > { %v1021_v10 = vpop.f32.mrf.mxu2  ;;  %v1020_v60 = vadd.f32 %v1019_v8, %v911_v17 }
 0x19a   : > { %v1034_v12 = vpop.f32.mrf.mxu3 }
 0x19b   : > { %v1033_v14 = vadd.f32 %v1032_v9, %v1020_v60 }
 0x19c   : > { %v899_v15 = vpop.f32.mrf.mxu0 }
 0x19d   : > { %v1040_v43 = vadd.f32 %v1580_v18, %v1033_v14 }
 0x19e   : > { %v912_v20 = vpop.f32.mrf.mxu1 }
 0x19f   : > { %1041 = vst [vmem:[%s289_s27] sm:$0xff] %v1040_v43 }
 0x1a0   : > { %1736 = shalt.err (!%p1733_p9)
}
 0x1a1   : > { %1513 = dma.vmem_to_hbm [thread:$0]  (%p1898_p13), %s1056_s28, 128, %s1058_s10, %s1043_s25  }
 0x1a2 PF: > { %s1069_s7 = sand.u32 1, %s1771_s18   ;;  %p2106_p10 = scmp.ge.s32.totalorder %s1783_s21, 2 }
 0x1a3   : > { %s1070_s30 = scalar_lea.sflag [#allocation4], %s1069_s7 }
 0x1a4   : > { %p1530_p11 = pnand %p2106_p10, %p1903_p4 }
 0x1a6   : > { %p1531_p0 = pneg %p1530_p11 }
 0x1a8   : > { %1766 = dma.done.wait (%p1531_p0), %s1070_s30, 128  }
 0x1a9   : > { %1768 = vsyncadd (%p1531_p0), %s1070_s30, 4294967168  ;;  %p20_p2 = scmp.ge.s32.totalorder %s1878_s24, 4   ;;  %s2107_s18 = smov %s1775_s19 }
 0x1aa   : > { %s2108_s19 = smov %s1779_s20  ;;  %s2109_s20 = smov %s1890_s29 }
 0x1ab   : > { %s2110_s21 = smov %s1878_s24  ;;  %22 = sbr.rel (!%p20_p2) target bundleno = 7 (0x7), region = 97 }
 0x1b0   :  { %1076 = vsyncpa [#allocation3], 1 }
 0x1b1   :  { %1078 = vsyncpa [#allocation3 + $0x1], 1 }
 0x1b2   :  { %1079 = vsyncpa [#allocation6], 1 }
 0x1b3   :  { %1080 = vsyncpa [#allocation9], 1 }
 0x1b4   :  { %1081 = vsyncpa [#allocation4], 1 }
 0x1b5   :  { %1083 = vsyncpa [#allocation4 + $0x1], 1 }

</bundles_post_ra>
